<compile_context>
chip_gen: v7x
topology: tpu7x:2x2x1
jax: 0.10.0
libtpu: 0.0.40
codegen_flags: <defaults>
</compile_context>

<pallas_src>
import jax
import jax.numpy as jnp
import numpy as np
from jax.experimental import pallas as pl
from jax.experimental.pallas import tpu as pltpu

LANE = 128            # vreg lane width
SUBLANE_BF16 = 16     # bf16 sublane packing


def _round_up(x, m):
    return (x + m - 1) // m * m


def _max_batch_tile():
    """256 on v6e/v7x (2x256^2 MXU), 128 on v5e (128x128 MXU)."""
    try:
        kind = jax.devices()[0].device_kind.lower()
    except Exception:
        return 256
    return 128 if "v5" in kind else 256


# --------------------------------------------------------------------------
# Pallas kernel: one fused GEMM + epilogue per batch tile (single grid axis)
# --------------------------------------------------------------------------
def encoder_wrapper_kernel(x_ref, w_fused_ref, b_fused_ref, w_cls_ref,
                           z_ref, logits_ref):
    # fused encoder+bottleneck GEMM: bf16 operands, f32 MXU accumulation
    z1 = jnp.dot(x_ref[...], w_fused_ref[...],
                 preferred_element_type=jnp.float32) + b_fused_ref[...]

    # Softsign; approx reciprocal goes to the EUP slot (off the VALU path)
    z = z1 * pl.reciprocal(1.0 + jnp.abs(z1), approx=True)
    z_ref[...] = z.astype(z_ref.dtype)

    # classifier (bias=False): bf16 operands, f32 accumulation
    logits_ref[...] = jnp.dot(z.astype(jnp.bfloat16), w_cls_ref[...],
                              preferred_element_type=jnp.float32
                              ).astype(logits_ref.dtype)


# --------------------------------------------------------------------------
# One-time parameter preparation: fuse, transpose, pad, cast (NOT per call)
# --------------------------------------------------------------------------
def prepare_params(params, d_in):
    latent = params["w_bot"].shape[0]
    n_cls = params["w_cls"].shape[0]
    lat_p = _round_up(latent, LANE)
    cls_p = _round_up(n_cls, LANE)
    din_p = _round_up(d_in, LANE)

    # Exact algebraic fusion of encoder + bottleneck (both Linear, no
    # nonlinearity in between).  Product in f32, cast to bf16 ONCE.
    w_fused_f32 = params["w_enc"].T @ params["w_bot"].T            # [d_in, latent]
    b_fused_f32 = params["b_enc"] @ params["w_bot"].T + params["b_bot"]

    w_fused = jnp.zeros((din_p, lat_p), jnp.bfloat16)
    w_fused = w_fused.at[:d_in, :latent].set(w_fused_f32.astype(jnp.bfloat16))

    b_fused = jnp.zeros((1, lat_p), jnp.float32).at[0, :latent].set(b_fused_f32)

    w_cls_t = jnp.zeros((lat_p, cls_p), jnp.bfloat16)
    w_cls_t = w_cls_t.at[:latent, :n_cls].set(params["w_cls"].T.astype(jnp.bfloat16))

    return {"w_fused": w_fused, "b_fused": b_fused, "w_cls_t": w_cls_t,
            "d_in": d_in, "din_p": din_p,
            "latent": latent, "lat_p": lat_p,
            "n_cls": n_cls, "cls_p": cls_p}


# --------------------------------------------------------------------------
# Wrapper
# --------------------------------------------------------------------------
def encoder_wrapper_forward(x_nchw, prepped):
    """x_nchw: [B, C, H, W] float32. Returns (z [B, latent], logits [B, n_cls])."""
    B = x_nchw.shape[0]
    d_in, din_p = prepped["d_in"], prepped["din_p"]
    lat_p, cls_p = prepped["lat_p"], prepped["cls_p"]

    # Batch tile: full 256-row MXU on v6e/v7x, 128 on v5e; tiny batches use a
    # single padded tile.  Batch axis is "parallel" so b_pad//tb >= 2 shards
    # across v7x's two TensorCores automatically.
    tb_cap = _max_batch_tile()
    b_pad = _round_up(B, SUBLANE_BF16)
    tb = b_pad if b_pad <= tb_cap else tb_cap
    b_pad = _round_up(b_pad, tb)

    # Pad with jnp.pad (fusable with the cast) — only batch rows and, if
    # d_in % 128 != 0, the tail columns; no full zero-materialize of x.
    x_flat = x_nchw.reshape(B, -1)
    x_p = jnp.pad(x_flat, ((0, b_pad - B), (0, din_p - d_in))).astype(jnp.bfloat16)

    grid = (b_pad // tb,)

    # Double-buffered VMEM footprint (bytes), capped at 32 MiB (v7x-safe).
    per_step = (tb * din_p * 2          # x tile (bf16)
                + din_p * lat_p * 2     # fused weight (bf16)
                + LANE * lat_p * 4      # bias (f32, padded tile)
                + lat_p * cls_p * 2     # classifier weight (bf16)
                + tb * lat_p * 4        # z out (f32)
                + tb * cls_p * 4)       # logits out (f32)
    vmem_limit = min(32 * 1024 * 1024,
                     max(16 * 1024 * 1024, 2 * per_step + 2 * 1024 * 1024))

    z_p, logits_p = pl.pallas_call(
        encoder_wrapper_kernel,
        out_shape=(jax.ShapeDtypeStruct((b_pad, lat_p), jnp.float32),
                   jax.ShapeDtypeStruct((b_pad, cls_p), jnp.float32)),
        grid_spec=pltpu.PrefetchScalarGridSpec(
            num_scalar_prefetch=0,
            grid=grid,
            in_specs=[
                pl.BlockSpec((tb, din_p),    lambda i: (i, 0)),   # x tile
                pl.BlockSpec((din_p, lat_p), lambda i: (0, 0)),   # fused weight
                pl.BlockSpec((1, lat_p),     lambda i: (0, 0)),   # fused bias
                pl.BlockSpec((lat_p, cls_p), lambda i: (0, 0)),   # W_cls^T
            ],
            out_specs=[
                pl.BlockSpec((tb, lat_p), lambda i: (i, 0)),      # z
                pl.BlockSpec((tb, cls_p), lambda i: (i, 0)),      # logits
            ],
        ),
        compiler_params=pltpu.CompilerParams(
            dimension_semantics=("parallel",),
            vmem_limit_bytes=vmem_limit,
        ),
    )(x_p, prepped["w_fused"], prepped["b_fused"], prepped["w_cls_t"])

    return z_p[:B, :prepped["latent"]], logits_p[:B, :prepped["n_cls"]]


# --------------------------------------------------------------------------
# Deterministic parameter construction (mirrors EncoderWrapper.__init__)
# --------------------------------------------------------------------------
def make_params(key, d_in, latent_dim, n_classes):
    k1, k2, k3, k4, k5 = jax.random.split(key, 5)

    # encoder: Linear(d_in -> latent_dim)
    bound_enc = 1.0 / np.sqrt(d_in)
    w_enc = jax.random.uniform(k1, (latent_dim, d_in), jnp.float32,
                               -bound_enc, bound_enc)
    b_enc = jax.random.uniform(k2, (latent_dim,), jnp.float32,
                               -bound_enc, bound_enc)

    # polca_bottleneck Linear: orthogonal init, rows scaled by
    # linspace(1.0, 0.1, latent_dim) * 0.5
    a = jax.random.normal(k3, (latent_dim, latent_dim), jnp.float32)
    q, r = jnp.linalg.qr(a)
    q = q * jnp.sign(jnp.diag(r))[None, :]
    scales = jnp.linspace(1.0, 0.1, latent_dim, dtype=jnp.float32)
    w_bot = q * (scales[:, None] * 0.5)
    bound_bot = 1.0 / np.sqrt(latent_dim)
    b_bot = jax.random.uniform(k4, (latent_dim,), jnp.float32,
                               -bound_bot, bound_bot)

    # classifier: Linear(latent_dim -> n_classes), bias=False
    w_cls = jax.random.uniform(k5, (n_classes, latent_dim), jnp.float32,
                               -bound_bot, bound_bot)

    return {"w_enc": w_enc, "b_enc": b_enc,
            "w_bot": w_bot, "b_bot": b_bot,
            "w_cls": w_cls}


def reference_forward(x_nchw, params):
    """Pure-JAX f32 reference of EncoderWrapper.forward for verification."""
    B = x_nchw.shape[0]
    xf = x_nchw.reshape(B, -1)
    z0 = xf @ params["w_enc"].T + params["b_enc"]
    z1 = z0 @ params["w_bot"].T + params["b_bot"]
    z = z1 / (1.0 + jnp.abs(z1))
    logits = z @ params["w_cls"].T
    return z, logits


if __name__ == "__main__":
    B, C, H, W = 2, 4, 16, 16
    latent_dim = 32
    class_labels = list(range(10))          # class_labels is not None -> (z, logits)
    n_classes = len(class_labels)
    d_in = C * H * W

    key = jax.random.PRNGKey(0)
    kx, kp = jax.random.split(key)
    x = jax.random.normal(kx, (B, C, H, W), jnp.float32)   # NCHW input
    params = make_params(kp, d_in, latent_dim, n_classes)
    prepped = prepare_params(params, d_in)                 # one-time layout prep

    z, logits = encoder_wrapper_forward(x, prepped)
    z = jax.block_until_ready(z)
    logits = jax.block_until_ready(logits)

    z_ref, logits_ref = reference_forward(x, params)
    assert z.shape == (B, latent_dim) and logits.shape == (B, n_classes)
    # tolerances relaxed for bf16 fused-GEMM operands + approx reciprocal
    np.testing.assert_allclose(np.asarray(z), np.asarray(z_ref),
                               rtol=2e-2, atol=2e-2)
    np.testing.assert_allclose(np.asarray(logits), np.asarray(logits_ref),
                               rtol=2e-2, atol=2e-2)

    print("KERNEL_OK")
</pallas_src>

<mosaic_0001>
module attributes {stable_mosaic.version = 11 : i64} {
  func.func @encoder_wrapper_kernel(%arg0: i32, %arg1: memref<16x1024xbf16, #tpu.memory_space<vmem>>, %arg2: memref<1024x128xbf16, #tpu.memory_space<vmem>>, %arg3: memref<1x128xf32, #tpu.memory_space<vmem>>, %arg4: memref<128x128xbf16, #tpu.memory_space<vmem>>, %arg5: memref<16x128xf32, #tpu.memory_space<vmem>>, %arg6: memref<16x128xf32, #tpu.memory_space<vmem>>) attributes {dimension_semantics = [#tpu.dimension_semantics<parallel>], iteration_bounds = array<i64: 1>, scalar_prefetch = 0 : i64, scratch_operands = 0 : i64, tpu.core_type = #tpu.core_type<tc>, window_params = [{transform_indices = @transform_0, window_bounds = array<i64: 16, 1024>}, {pipeline_mode = #tpu.pipeline_mode<synchronous>, transform_indices = @transform_1, window_bounds = array<i64: 1024, 128>}, {pipeline_mode = #tpu.pipeline_mode<synchronous>, transform_indices = @transform_2, window_bounds = array<i64: 1, 128>}, {pipeline_mode = #tpu.pipeline_mode<synchronous>, transform_indices = @transform_3, window_bounds = array<i64: 128, 128>}, {transform_indices = @transform_4, window_bounds = array<i64: 16, 128>}, {transform_indices = @transform_5, window_bounds = array<i64: 16, 128>}]} {
    %c0 = arith.constant 0 : index
    %c0_0 = arith.constant 0 : index
    %0 = vector.load %arg1[%c0, %c0_0] : memref<16x1024xbf16, #tpu.memory_space<vmem>>, vector<16x1024xbf16>
    %c0_1 = arith.constant 0 : index
    %c0_2 = arith.constant 0 : index
    %1 = vector.load %arg2[%c0_1, %c0_2] : memref<1024x128xbf16, #tpu.memory_space<vmem>>, vector<1024x128xbf16>
    %cst = arith.constant dense<0.000000e+00> : vector<16x128xf32>
    %2 = tpu.matmul %0, %1, %cst {dimension_numbers = #tpu.dot_dimension_numbers<[1], [0], [0], [1], [0, 0, 1, 1], [], []>} : vector<16x1024xbf16>, vector<1024x128xbf16>, vector<16x128xf32> -> vector<16x128xf32>
    %c0_3 = arith.constant 0 : index
    %c0_4 = arith.constant 0 : index
    %3 = vector.load %arg3[%c0_3, %c0_4] : memref<1x128xf32, #tpu.memory_space<vmem>>, vector<1x128xf32>
    %4 = vector.broadcast %3 : vector<1x128xf32> to vector<16x128xf32>
    %5 = arith.addf %2, %4 : vector<16x128xf32>
    %6 = math.absf %5 : vector<16x128xf32>
    %cst_5 = arith.constant 1.000000e+00 : f32
    %7 = vector.broadcast %cst_5 : f32 to vector<16x128xf32>
    %8 = arith.addf %7, %6 : vector<16x128xf32>
    %9 = tpu.reciprocal %8 {approx = true} : vector<16x128xf32> -> vector<16x128xf32>
    %10 = arith.mulf %5, %9 : vector<16x128xf32>
    %c0_6 = arith.constant 0 : index
    %c0_7 = arith.constant 0 : index
    %11 = vector.load %arg5[%c0_6, %c0_7] : memref<16x128xf32, #tpu.memory_space<vmem>>, vector<16x128xf32>
    tpu.vector_store %arg5[%c0_6, %c0_7], %10 {strides = array<i32>} : memref<16x128xf32, #tpu.memory_space<vmem>>, vector<16x128xf32>,
    %12 = arith.truncf %10 : vector<16x128xf32> to vector<16x128xbf16>
    %c0_8 = arith.constant 0 : index
    %c0_9 = arith.constant 0 : index
    %13 = vector.load %arg4[%c0_8, %c0_9] : memref<128x128xbf16, #tpu.memory_space<vmem>>, vector<128x128xbf16>
    %cst_10 = arith.constant dense<0.000000e+00> : vector<16x128xf32>
    %14 = tpu.matmul %12, %13, %cst_10 {dimension_numbers = #tpu.dot_dimension_numbers<[1], [0], [0], [1], [0, 0, 1, 1], [], []>} : vector<16x128xbf16>, vector<128x128xbf16>, vector<16x128xf32> -> vector<16x128xf32>
    %c0_11 = arith.constant 0 : index
    %c0_12 = arith.constant 0 : index
    %15 = vector.load %arg6[%c0_11, %c0_12] : memref<16x128xf32, #tpu.memory_space<vmem>>, vector<16x128xf32>
    tpu.vector_store %arg6[%c0_11, %c0_12], %14 {strides = array<i32>} : memref<16x128xf32, #tpu.memory_space<vmem>>, vector<16x128xf32>,
    return
  }
  func.func @transform_0(%arg0: i32) -> (i32, i32) {
    %c0_i32 = arith.constant 0 : i32
    %c0_i32_0 = arith.constant 0 : i32
    return %arg0, %c0_i32 : i32, i32
  }
  func.func @transform_1(%arg0: i32) -> (i32, i32) {
    %c0_i32 = arith.constant 0 : i32
    %c0_i32_0 = arith.constant 0 : i32
    %c0_i32_1 = arith.constant 0 : i32
    return %c0_i32, %c0_i32_0 : i32, i32
  }
  func.func @transform_2(%arg0: i32) -> (i32, i32) {
    %c0_i32 = arith.constant 0 : i32
    %c0_i32_0 = arith.constant 0 : i32
    %c0_i32_1 = arith.constant 0 : i32
    return %c0_i32, %c0_i32_0 : i32, i32
  }
  func.func @transform_3(%arg0: i32) -> (i32, i32) {
    %c0_i32 = arith.constant 0 : i32
    %c0_i32_0 = arith.constant 0 : i32
    %c0_i32_1 = arith.constant 0 : i32
    return %c0_i32, %c0_i32_0 : i32, i32
  }
  func.func @transform_4(%arg0: i32) -> (i32, i32) {
    %c0_i32 = arith.constant 0 : i32
    %c0_i32_0 = arith.constant 0 : i32
    return %arg0, %c0_i32 : i32, i32
  }
  func.func @transform_5(%arg0: i32) -> (i32, i32) {
    %c0_i32 = arith.constant 0 : i32
    %c0_i32_0 = arith.constant 0 : i32
    return %arg0, %c0_i32 : i32, i32
  }
}

</mosaic_0001>

<bundles_post_ra>
// kernel: tpu_custom_call.1
= control target key start
LH: loop header
LB: loop body
LE: loop exit
PB: predicated region body
PF: predicated region fallthrough
CT: control target
= control target key end

     0   :  { %11 = vsyncpa [#allocation3], 0  ;;  %s1463_s0 = inlined_call_operand.hbm [shape: bf16[16,1024], index: 0, kind: input, shape index: {}]   ;;  %s1464_s1 = inlined_call_operand.hbm [shape: bf16[1024,128], index: 1, kind: input, shape index: {}]   ;;  %s1465_s2 = inlined_call_operand.vmem [shape: f32[1,128], index: 2, kind: input, shape index: {}]   ;;  %s1466_s3 = inlined_call_operand.hbm [shape: bf16[128,128], index: 3, kind: input, shape index: {}]   ;;  %s1467_s4 = inlined_call_operand.hbm [shape: f32[16,128], index: 4, kind: output, shape index: {0}]   ;;  %s1468_s5 = inlined_call_operand.hbm [shape: f32[16,128], index: 5, kind: output, shape index: {1}]  }
   0x1   :  { %12 = vsyncpa [#allocation6], 0 }
   0x2   :  { %13 = vsyncpa [#allocation4], 0 }
   0x3   :  { %14 = vsyncpa [#allocation10], 0  ;;  %s1351_s18 = smov [#allocation5]   ;;  %s1233_s22 = scalar_lea.hbm %s1464_s1, 8192 }
   0x4   :  { %s32_s19 = sshll.u32 %s1351_s18, 4  ;;  %p1234_p0 = scmp.ne.s32.totalorder %s1464_s1, %s1233_s22  ;;  %s33_s19 = int_to_ptr.vmem [resolvable:$true] %s32_s19 }
   0x5   :  { %p1237_p1 = scmp.lt.u32.totalorder %s1233_s22, %s1464_s1 }
   0x7   :  { %p1239_p2 = pnand %p1237_p1, %p1234_p0 }
   0x9   :  { %1242 = shalt.err (!%p1239_p2)
}
   0xa   :  { %s1243_s27 = scalar_lea.vmem %s33_s19, 8192  ;;  %p1248_p4 = scmp.lt.s32.totalorder %s33_s19, %s33_s19 }
   0xb   :  { %p1244_p3 = scmp.ne.s32.totalorder %s33_s19, %s1243_s27  ;;  %p1249_p5 = scmp.lt.s32.totalorder %s1243_s27, %s1243_s27 }
   0xd   :  { %p1250_p6 = por %p1249_p5, %p1248_p4 }
   0xf   :  { %p1251_p7 = pnand %p1250_p6, %p1244_p3 }
  0x11   :  { %1254 = shalt.err (!%p1251_p7)
}
  0x12   :  { %s1352_s28 = smov 64   ;;  %s1353_s29 = smov 4  }
  0x13   :  { %38 = dma.hbm_to_vmem [thread:$0]  %s1464_s1, 8192, %s33_s19, [#allocation6], %s1352_s28, %s1352_s28, %s1353_s29  }
  0x14   :  { %s1354_s7 = smov [#allocation2]   ;;  %s1255_s11 = scalar_lea.hbm %s1463_s0, 1024 }
  0x15   :  { %s20_s8 = sshll.u32 %s1354_s7, 4  ;;  %p1256_p8 = scmp.ne.s32.totalorder %s1463_s0, %s1255_s11  ;;  %s21_s8 = int_to_ptr.vmem [resolvable:$true] %s20_s8 }
  0x16   :  { %p1259_p9 = scmp.lt.u32.totalorder %s1255_s11, %s1463_s0 }
  0x18   :  { %p1261_p10 = pnand %p1259_p9, %p1256_p8 }
  0x1a   :  { %1264 = shalt.err (!%p1261_p10)
}
  0x1b   :  { %s1265_s16 = scalar_lea.vmem %s21_s8, 1024  ;;  %p1270_p12 = scmp.lt.s32.totalorder %s21_s8, %s21_s8 }
  0x1c   :  { %p1266_p11 = scmp.ne.s32.totalorder %s21_s8, %s1265_s16  ;;  %p1271_p13 = scmp.lt.s32.totalorder %s1265_s16, %s1265_s16 }
  0x1e   :  { %p1272_p0 = por %p1271_p13, %p1270_p12 }
  0x20   :  { %p1273_p1 = pnand %p1272_p0, %p1266_p11 }
  0x22   :  { %1276 = shalt.err (!%p1273_p1)
}
  0x23   :  { %s1355_s1 = smov 512   ;;  %s1356_s17 = smov 32  }
  0x24   :  { %26 = dma.hbm_to_vmem [thread:$0]  %s1463_s0, 1024, %s21_s8, [#allocation3], %s1355_s1, %s1355_s1, %s1356_s17  }
  0x25   :  { %s1357_s20 = smov [#allocation7]   ;;  %s1277_s24 = scalar_lea.hbm %s1466_s3, 1024 }
  0x26   :  { %s46_s21 = sshll.u32 %s1357_s20, 4  ;;  %p1278_p2 = scmp.ne.s32.totalorder %s1466_s3, %s1277_s24  ;;  %s47_s21 = int_to_ptr.vmem [resolvable:$true] %s46_s21 }
  0x27   :  { %p1281_p3 = scmp.lt.u32.totalorder %s1277_s24, %s1466_s3 }
  0x29   :  { %p1283_p4 = pnand %p1281_p3, %p1278_p2 }
  0x2b   :  { %1286 = shalt.err (!%p1283_p4)
}
  0x2c   :  { %s1287_s6 = scalar_lea.vmem %s47_s21, 1024  ;;  %p1292_p6 = scmp.lt.s32.totalorder %s47_s21, %s47_s21 }
  0x2d   :  { %p1288_p5 = scmp.ne.s32.totalorder %s47_s21, %s1287_s6  ;;  %p1293_p7 = scmp.lt.s32.totalorder %s1287_s6, %s1287_s6 }
  0x2f   :  { %p1294_p8 = por %p1293_p7, %p1292_p6 }
  0x31   :  { %p1295_p9 = pnand %p1294_p8, %p1288_p5 }
  0x33   :  { %1298 = shalt.err (!%p1295_p9)
}
  0x34   :  { %52 = dma.hbm_to_vmem [thread:$0]  %s1466_s3, 1024, %s47_s21, [#allocation6], %s1352_s28, %s1352_s28, %s1353_s29  }
  0x35   :  { %1343 = dma.done.wait [#allocation3], 1024  }
  0x36   :  { %1344 = vsyncadd [#allocation3], 4294966272 }
  0x37   :  { %1345 = dma.done.wait [#allocation6], 9216  }
  0x38   :  { %1346 = vsyncadd [#allocation6], 4294958080  ;;  %v1157_v0 = vld [vmem:[#allocation5 + $0x40] sm:$0xff]   ;;  %v1161_v4 = vld [vmem:[#allocation5 + $0x48] sm:$0xff]   ;;  %vm1359_vm0 = vmmov 0  }
  0x39   :  { %v1158_v1 = vld [vmem:[#allocation5 + $0xc0] sm:$0xff]   ;;  %1027 = vmatprep.subr.bf16.mxu0 %v1157_v0  ;;  %v1162_v5 = vld [vmem:[#allocation5 + $0xc8] sm:$0xff]   ;;  %v1165_v8 = vld [vmem:[#allocation5 + $0x50] sm:$0xff]  }
  0x3a   :  { %v1159_v2 = vld [vmem:[#allocation5] sm:$0xff]   ;;  %1049 = vmatprep.subr.bf16.mxu1 %v1158_v1  ;;  %v1163_v6 = vld [vmem:[#allocation5 + $0x8] sm:$0xff]   ;;  %v1166_v9 = vld [vmem:[#allocation5 + $0xd0] sm:$0xff]  }
  0x3b   :  { %v1160_v3 = vld [vmem:[#allocation5 + $0x80] sm:$0xff]   ;;  %1028 = vmatpush3.bf16.msra.mxu0 %v1159_v2  ;;  %v1164_v7 = vld [vmem:[#allocation5 + $0x88] sm:$0xff]   ;;  %v1167_v10 = vld [vmem:[#allocation5 + $0x10] sm:$0xff]  }
  0x3c   :  { %1050 = vmatpush3.bf16.msra.mxu1 %v1160_v3  ;;  %1029 = vmatprep.subr.bf16.mxu0 %v1161_v4  ;;  %v1168_v11 = vld [vmem:[#allocation5 + $0x90] sm:$0xff]   ;;  %v1169_v12 = vld [vmem:[#allocation5 + $0x58] sm:$0xff]   ;;  %v1173_v16 = vld [vmem:[#allocation5 + $0x60] sm:$0xff]  }
  0x3d   :  { %1051 = vmatprep.subr.bf16.mxu1 %v1162_v5  ;;  %v1170_v13 = vld [vmem:[#allocation5 + $0xd8] sm:$0xff]   ;;  %v1174_v17 = vld [vmem:[#allocation5 + $0xe0] sm:$0xff]   ;;  %v1177_v20 = vld [vmem:[#allocation5 + $0x68] sm:$0xff]  }
  0x3e   :  { %v1171_v14 = vld [vmem:[#allocation5 + $0x18] sm:$0xff]   ;;  %v1175_v18 = vld [vmem:[#allocation5 + $0x20] sm:$0xff]   ;;  %v1178_v21 = vld [vmem:[#allocation5 + $0xe8] sm:$0xff]  }
  0x3f   :  { %1030 = vmatpush3.bf16.msra.mxu0 %v1163_v6  ;;  %v1172_v15 = vld [vmem:[#allocation5 + $0x98] sm:$0xff]   ;;  %v1176_v19 = vld [vmem:[#allocation5 + $0xa0] sm:$0xff]   ;;  %v1179_v22 = vld [vmem:[#allocation5 + $0x28] sm:$0xff]  }
  0x40   :  { %1052 = vmatpush3.bf16.msra.mxu1 %v1164_v7  ;;  %1031 = vmatprep.subr.bf16.mxu0 %v1165_v8  ;;  %v1180_v23 = vld [vmem:[#allocation5 + $0xa8] sm:$0xff]   ;;  %v1181_v24 = vld [vmem:[#allocation5 + $0x70] sm:$0xff]   ;;  %v1185_v28 = vld [vmem:[#allocation5 + $0x78] sm:$0xff]  }
  0x41   :  { %1053 = vmatprep.subr.bf16.mxu1 %v1166_v9  ;;  %v1182_v25 = vld [vmem:[#allocation5 + $0xf0] sm:$0xff]   ;;  %v1186_v29 = vld [vmem:[#allocation5 + $0xf8] sm:$0xff]   ;;  %v63_v32 = vld [vmem:[#allocation2] sm:$0xff] }
  0x42   :  { %v1183_v26 = vld [vmem:[#allocation5 + $0x30] sm:$0xff]   ;;  %v1187_v30 = vld [vmem:[#allocation5 + $0x38] sm:$0xff]   ;;  %v67_v33 = vld [vmem:[#allocation2 + $0x20] sm:$0xff] }
  0x43   :  { %1032 = vmatpush3.bf16.msra.mxu0 %v1167_v10  ;;  %v1184_v27 = vld [vmem:[#allocation5 + $0xb0] sm:$0xff]   ;;  %v1188_v31 = vld [vmem:[#allocation5 + $0xb8] sm:$0xff]   ;;  %v64_v34 = vld [vmem:[#allocation2 + $0x8] sm:$0xff]  ;;  %v947_v35 = vcombine.low %v63_v32, %v67_v33  ;;  %v948_v36 = vcombine.high %v63_v32, %v67_v33 }
  0x44   :  { %1054 = vmatpush3.bf16.msra.mxu1 %v1168_v11  ;;  %1033 = vmatprep.subr.bf16.mxu0 %v1169_v12  ;;  %v68_v37 = vld [vmem:[#allocation2 + $0x28] sm:$0xff]  ;;  %v1189_v40 = vld [vmem:[#allocation5 + $0x140] sm:$0xff]   ;;  %v1197_v48 = vld [vmem:[#allocation5 + $0x150] sm:$0xff]  }
  0x45   :  { %1055 = vmatprep.subr.bf16.mxu1 %v1170_v13  ;;  %v949_v38 = vcombine.low %v64_v34, %v68_v37  ;;  %v950_v39 = vcombine.high %v64_v34, %v68_v37  ;;  %662 = vmatprep.mubr.bf16.mxu0 %v948_v36  ;;  %v1190_v41 = vld [vmem:[#allocation5 + $0x1c0] sm:$0xff]   ;;  %v1193_v44 = vld [vmem:[#allocation5 + $0x148] sm:$0xff]   ;;  %v1198_v49 = vld [vmem:[#allocation5 + $0x1d0] sm:$0xff]  }
  0x46   :  { %v1191_v42 = vld [vmem:[#allocation5 + $0x100] sm:$0xff]   ;;  %v1194_v45 = vld [vmem:[#allocation5 + $0x1c8] sm:$0xff]   ;;  %v1199_v50 = vld [vmem:[#allocation5 + $0x110] sm:$0xff]  }
  0x47   :  { %1034 = vmatpush3.bf16.msra.mxu0 %v1171_v14  ;;  %703 = vmatprep.mubr.bf16.mxu1 %v950_v39  ;;  %v1192_v43 = vld [vmem:[#allocation5 + $0x180] sm:$0xff]   ;;  %v1195_v46 = vld [vmem:[#allocation5 + $0x108] sm:$0xff]   ;;  %v1200_v51 = vld [vmem:[#allocation5 + $0x190] sm:$0xff]  }
  0x48   :  { %1056 = vmatpush3.bf16.msra.mxu1 %v1172_v15  ;;  %1035 = vmatprep.subr.bf16.mxu0 %v1173_v16  ;;  %v1196_v47 = vld [vmem:[#allocation5 + $0x188] sm:$0xff]   ;;  %v1201_v52 = vld [vmem:[#allocation5 + $0x158] sm:$0xff]   ;;  %v1205_v56 = vld [vmem:[#allocation5 + $0x160] sm:$0xff]  }
  0x49   :  { %1057 = vmatprep.subr.bf16.mxu1 %v1174_v17  ;;  %v1202_v53 = vld [vmem:[#allocation5 + $0x1d8] sm:$0xff]   ;;  %v1206_v57 = vld [vmem:[#allocation5 + $0x1e0] sm:$0xff]   ;;  %v1209_v60 = vld [vmem:[#allocation5 + $0x168] sm:$0xff]   ;;  %v1358_v17 = vmov 0.0  }
  0x4a   :  { %v1203_v54 = vld [vmem:[#allocation5 + $0x118] sm:$0xff]   ;;  %v1207_v58 = vld [vmem:[#allocation5 + $0x120] sm:$0xff]   ;;  %v1210_v61 = vld [vmem:[#allocation5 + $0x1e8] sm:$0xff]  }
  0x4b   :  { %1036 = vmatpush3.bf16.msra.mxu0 %v1175_v18  ;;  %v1204_v55 = vld [vmem:[#allocation5 + $0x198] sm:$0xff]   ;;  %v1208_v59 = vld [vmem:[#allocation5 + $0x1a0] sm:$0xff]   ;;  %v1211_v62 = vld [vmem:[#allocation5 + $0x128] sm:$0xff]  }
  0x4c   :  { %1058 = vmatpush3.bf16.msra.mxu1 %v1176_v19  ;;  %1037 = vmatprep.subr.bf16.mxu0 %v1177_v20  ;;  %v1212_v63 = vld [vmem:[#allocation5 + $0x1a8] sm:$0xff]   ;;  %v1213_v0 = vld [vmem:[#allocation5 + $0x170] sm:$0xff]   ;;  %v1217_v4 = vld [vmem:[#allocation5 + $0x178] sm:$0xff]  }
  0x4d   :  { %1059 = vmatprep.subr.bf16.mxu1 %v1178_v21  ;;  %v1214_v1 = vld [vmem:[#allocation5 + $0x1f0] sm:$0xff]   ;;  %v1218_v5 = vld [vmem:[#allocation5 + $0x1f8] sm:$0xff]   ;;  %v1221_v16 = vld [vmem:[#allocation7] sm:$0xff]  }
  0x4e   :  { %v1215_v2 = vld [vmem:[#allocation5 + $0x130] sm:$0xff]   ;;  %v1219_v6 = vld [vmem:[#allocation5 + $0x138] sm:$0xff]   ;;  %v1222_v18 = vld [vmem:[#allocation7 + $0x8] sm:$0xff]  }
  0x4f   :  { %1038 = vmatpush3.bf16.msra.mxu0 %v1179_v22  ;;  %v1216_v3 = vld [vmem:[#allocation5 + $0x1b0] sm:$0xff]   ;;  %v1220_v7 = vld [vmem:[#allocation5 + $0x1b8] sm:$0xff]   ;;  %v1225_v21 = vld [vmem:[#allocation7 + $0x20] sm:$0xff]  }
  0x50   :  { %1060 = vmatpush3.bf16.msra.mxu1 %v1180_v23  ;;  %1039 = vmatprep.subr.bf16.mxu0 %v1181_v24  ;;  %v65_v8 = vld [vmem:[#allocation2 + $0x10] sm:$0xff]  ;;  %v66_v12 = vld [vmem:[#allocation2 + $0x18] sm:$0xff]  ;;  %v1226_v22 = vld [vmem:[#allocation7 + $0x28] sm:$0xff]  }
  0x51   :  { %1061 = vmatprep.subr.bf16.mxu1 %v1182_v25  ;;  %v69_v9 = vld [vmem:[#allocation2 + $0x30] sm:$0xff]  ;;  %v70_v13 = vld [vmem:[#allocation2 + $0x38] sm:$0xff] }
  0x52   :  { %v951_v10 = vcombine.low %v65_v8, %v69_v9  ;;  %v952_v11 = vcombine.high %v65_v8, %v69_v9  ;;  %v953_v14 = vcombine.low %v66_v12, %v70_v13  ;;  %v954_v15 = vcombine.high %v66_v12, %v70_v13  ;;  %v1223_v19 = vld [vmem:[#allocation7 + $0x10] sm:$0xff]   ;;  %v1224_v20 = vld [vmem:[#allocation7 + $0x18] sm:$0xff]  }
  0x53   :  { %1040 = vmatpush3.bf16.msra.mxu0 %v1183_v26  ;;  %v1227_v23 = vld [vmem:[#allocation7 + $0x30] sm:$0xff]   ;;  %v1228_v24 = vld [vmem:[#allocation7 + $0x38] sm:$0xff]  }
  0x54   :  { %1062 = vmatpush3.bf16.msra.mxu1 %v1184_v27  ;;  %1041 = vmatprep.subr.bf16.mxu0 %v1185_v28  ;;  %v946_v27 = vld [vmem:[%s1465_s2] ss:$0 sm:$0xff]  ;;  %s1360_s2 = smov [#allocation8]  }
  0x55   :  { %1063 = vmatprep.subr.bf16.mxu1 %v1186_v29  ;;  %s917_s29 = sshll.u32 %s1360_s2, 4  ;;  %s918_s29 = int_to_ptr.vmem [resolvable:$true] %s917_s29 }
  0x56   :  { %s1299_s8 = scalar_lea.vmem %s918_s29, 256  ;;  %p1304_p11 = scmp.lt.s32.totalorder %s918_s29, %s918_s29 }
  0x57   :  { %1042 = vmatpush3.bf16.msra.mxu0 %v1187_v30  ;;  %p1300_p10 = scmp.ne.s32.totalorder %s918_s29, %s1299_s8  ;;  %p1305_p12 = scmp.lt.s32.totalorder %s1299_s8, %s1299_s8 }
  0x58   :  { %1064 = vmatpush3.bf16.msra.mxu1 %v1188_v31  ;;  %1071 = vmatprep.subr.bf16.mxu0 %v1189_v40 }
  0x59   :  { %1093 = vmatprep.subr.bf16.mxu1 %v1190_v41  ;;  %p1306_p13 = por %p1305_p12, %p1304_p11 }
  0x5a   :  { %663 = vmatmul.mubr.bf16.vlgmr.msra.gmra.mrb[0].mxu0 %v947_v35 }
  0x5b   :  { %704 = vmatmul.mubr.bf16.vlgmr.msra.gmra.mrb[0].mxu1 %v949_v38  ;;  %1072 = vmatpush3.bf16.msra.mxu0 %v1191_v42  ;;  %p1307_p0 = pnand %p1306_p13, %p1300_p10 }
  0x5c   :  { %1094 = vmatpush3.bf16.msra.mxu1 %v1192_v43  ;;  %1073 = vmatprep.subr.bf16.mxu0 %v1193_v44 }
  0x5d   :  { %1095 = vmatprep.subr.bf16.mxu1 %v1194_v45  ;;  %744 = vmatprep.mubr.bf16.mxu0 %v952_v11 }
  0x5e   :  { %785 = vmatprep.mubr.bf16.mxu1 %v954_v15 }
  0x5f   :  { %1074 = vmatpush3.bf16.msra.mxu0 %v1195_v46 }
  0x60   :  { %1096 = vmatpush3.bf16.msra.mxu1 %v1196_v47  ;;  %1075 = vmatprep.subr.bf16.mxu0 %v1197_v48 }
  0x61   :  { %1097 = vmatprep.subr.bf16.mxu1 %v1198_v49 }
  0x63   :  { %1076 = vmatpush3.bf16.msra.mxu0 %v1199_v50 }
  0x64   :  { %1098 = vmatpush3.bf16.msra.mxu1 %v1200_v51  ;;  %1077 = vmatprep.subr.bf16.mxu0 %v1201_v52 }
  0x65   :  { %1099 = vmatprep.subr.bf16.mxu1 %v1202_v53 }
  0x67   :  { %1078 = vmatpush3.bf16.msra.mxu0 %v1203_v54 }
  0x68   :  { %1100 = vmatpush3.bf16.msra.mxu1 %v1204_v55  ;;  %1079 = vmatprep.subr.bf16.mxu0 %v1205_v56 }
  0x69   :  { %1101 = vmatprep.subr.bf16.mxu1 %v1206_v57 }
  0x6b   :  { %1080 = vmatpush3.bf16.msra.mxu0 %v1207_v58 }
  0x6c   :  { %1102 = vmatpush3.bf16.msra.mxu1 %v1208_v59  ;;  %1081 = vmatprep.subr.bf16.mxu0 %v1209_v60 }
  0x6d   :  { %1103 = vmatprep.subr.bf16.mxu1 %v1210_v61 }
  0x6f   :  { %1082 = vmatpush3.bf16.msra.mxu0 %v1211_v62 }
  0x70   :  { %1104 = vmatpush3.bf16.msra.mxu1 %v1212_v63  ;;  %1083 = vmatprep.subr.bf16.mxu0 %v1213_v0 }
  0x71   :  { %1105 = vmatprep.subr.bf16.mxu1 %v1214_v1 }
  0x73   :  { %1084 = vmatpush3.bf16.msra.mxu0 %v1215_v2 }
  0x74   :  { %1106 = vmatpush3.bf16.msra.mxu1 %v1216_v3  ;;  %1085 = vmatprep.subr.bf16.mxu0 %v1217_v4 }
  0x75   :  { %1107 = vmatprep.subr.bf16.mxu1 %v1218_v5 }
  0x77   :  { %1086 = vmatpush3.bf16.msra.mxu0 %v1219_v6 }
  0x78   :  { %1108 = vmatpush3.bf16.msra.mxu1 %v1220_v7  ;;  %1124 = vmatprep.subr.bf16.mxu0 %v1358_v17 }
  0x7a   :  { %745 = vmatmul.mubr.bf16.vlgmr.msra.gmra.mrb[4].mxu0 %v951_v10 }
  0x7b   :  { %786 = vmatmul.mubr.bf16.vlgmr.msra.gmra.mrb[4].mxu1 %v953_v14  ;;  %1125 = vmatpush3.bf16.msra.mxu0 %v1221_v16 }
  0x7c   :  { %1126 = vmatprep.subr.bf16.mxu0 %v1358_v17  ;;  %1140 = vmatprep.mubr.msk.bf16.mxu0 %vm1359_vm0, %v1358_v17 }
  0x7f   :  { %1127 = vmatpush3.bf16.msra.mxu0 %v1222_v18 }
  0x80   :  { %1128 = vmatprep.subr.bf16.mxu0 %v1358_v17 }
  0x83   :  { %1129 = vmatpush3.bf16.msra.mxu0 %v1223_v19 }
  0x84   :  { %1130 = vmatprep.subr.bf16.mxu0 %v1358_v17 }
  0x87   :  { %1131 = vmatpush3.bf16.msra.mxu0 %v1224_v20 }
  0x88   :  { %1132 = vmatprep.subr.bf16.mxu0 %v1358_v17 }
  0x8b   :  { %1133 = vmatpush3.bf16.msra.mxu0 %v1225_v21 }
  0x8c   :  { %1134 = vmatprep.subr.bf16.mxu0 %v1358_v17 }
  0x8f   :  { %1135 = vmatpush3.bf16.msra.mxu0 %v1226_v22 }
  0x90   :  { %1136 = vmatprep.subr.bf16.mxu0 %v1358_v17 }
  0x93   :  { %1137 = vmatpush3.bf16.msra.mxu0 %v1227_v23 }
  0x94   :  { %1138 = vmatprep.subr.bf16.mxu0 %v1358_v17 }
  0x97   :  { %1139 = vmatpush3.bf16.msra.mxu0 %v1228_v24 }
 0x12d   :  { %v1043_v25 = vpop.f32.mrb[0].mxu0 }
 0x12e   :  { %v1065_v26 = vpop.f32.mrb[0].mxu1  ;;  %v1044_v28 = vpop.f32.mrb[1].mxu0 }
 0x12f   :  { %v1045_v29 = vadd.f32 %v1044_v28, %v1043_v25  ;;  %v1066_v30 = vpop.f32.mrb[1].mxu1  ;;  %v1046_v31 = vpop.f32.mrb[2].mxu0 }
 0x130   :  { %v1067_v32 = vadd.f32 %v1066_v30, %v1065_v26  ;;  %v1068_v33 = vpop.f32.mrb[2].mxu1  ;;  %v1047_v34 = vpop.f32.mrb[3].mxu0 }
 0x131   :  { %v665_v35 = vadd.f32 %v1045_v29, %v946_v27  ;;  %v1048_v36 = vadd.f32 %v1047_v34, %v1046_v31  ;;  %v1069_v37 = vpop.f32.mrb[3].mxu1 }
 0x132   :  { %v1070_v38 = vadd.f32 %v1069_v37, %v1068_v33 }
 0x133   :  { %v706_v39 = vadd.f32 %v1067_v32, %v665_v35  ;;  %v668_v40 = vadd.f32 %v1048_v36, %v946_v27 }
 0x135   :  { %v709_v41 = vadd.f32 %v1070_v38, %v668_v40 }
 0x14d   :  { %v1087_v42 = vpop.f32.mrb[4].mxu0 }
 0x14e   :  { %v1109_v43 = vpop.f32.mrb[4].mxu1  ;;  %v1088_v44 = vpop.f32.mrb[5].mxu0 }
 0x14f   :  { %v1089_v45 = vadd.f32 %v1088_v44, %v1087_v42  ;;  %v1110_v46 = vpop.f32.mrb[5].mxu1  ;;  %v1090_v47 = vpop.f32.mrb[6].mxu0 }
 0x150   :  { %v1111_v48 = vadd.f32 %v1110_v46, %v1109_v43  ;;  %v1112_v49 = vpop.f32.mrb[6].mxu1  ;;  %v1091_v50 = vpop.f32.mrb[7].mxu0 }
 0x151   :  { %v747_v51 = vadd.f32 %v1089_v45, %v706_v39  ;;  %v1092_v52 = vadd.f32 %v1091_v50, %v1090_v47  ;;  %v1113_v53 = vpop.f32.mrb[7].mxu1 }
 0x152   :  { %v1114_v54 = vadd.f32 %v1113_v53, %v1112_v49 }
 0x153   :  { %v788_v55 = vadd.f32 %v1111_v48, %v747_v51  ;;  %v750_v56 = vadd.f32 %v1092_v52, %v709_v41 }
 0x155   :  { %v794_v57 = vand.u32 2147483647, %v788_v55  ;;  %v791_v58 = vadd.f32 %v1114_v54, %v750_v56 }
 0x157   :  { %v796_v59 = vadd.f32 1.0, %v794_v57  ;;  %v795_v60 = vand.u32 2147483647, %v791_v58 }
 0x159   :  { %1229 = vrcp.f32 %v796_v59  ;;  %v797_v61 = vadd.f32 1.0, %v795_v60 }
 0x15b   :  { %1231 = vrcp.f32 %v797_v61 }
 0x163   :  { %v1230_v62 = vpop.eup %1229 }
 0x164   :  { %v800_v63 = vmul.f32 %v1230_v62, %v788_v55 }
 0x165   :  { %v1232_v0 = vpop.eup %1231 }
 0x166   :  { %802 = vst [vmem:[#allocation8] sm:$0xff] %v800_v63  ;;  %v801_v1 = vmul.f32 %v1232_v0, %v791_v58 }
 0x168   :  { %803 = vst [vmem:[#allocation8 + $0x8] sm:$0xff] %v801_v1  ;;  %v804_v2 = vpack.c.bf16 %v801_v1, %v800_v63 }
 0x16a   :  { %1141 = vmatmul.mubr.bf16.vlgmr.msra.gmra.mrb[8].mxu0 %v804_v2 }
 0x16b   :  { %1310 = shalt.err (!%p1307_p0)
}
 0x16c   :  { %s1311_s11 = scalar_lea.hbm %s1467_s4, 256 }
 0x16d   :  { %p1312_p1 = scmp.ne.s32.totalorder %s1467_s4, %s1311_s11  ;;  %p1315_p2 = scmp.lt.u32.totalorder %s1311_s11, %s1467_s4 }
 0x16f   :  { %p1317_p3 = pnand %p1315_p2, %p1312_p1 }
 0x171   :  { %1320 = shalt.err (!%p1317_p3)
}
 0x172   :  { %s1361_s16 = smov 128   ;;  %s1362_s1 = smov 8  }
 0x173   :  { %923 = dma.vmem_to_hbm [thread:$0]  %s918_s29, 256, %s1467_s4, [#allocation4], %s1361_s16, %s1361_s16, %s1362_s1  }
 0x174   :  { %s1363_s19 = smov [#allocation9]  }
 0x175   :  { %s929_s20 = sshll.u32 %s1363_s19, 4  ;;  %s930_s20 = int_to_ptr.vmem [resolvable:$true] %s929_s20 }
 0x176   :  { %s1321_s21 = scalar_lea.vmem %s930_s20, 256  ;;  %p1326_p5 = scmp.lt.s32.totalorder %s930_s20, %s930_s20 }
 0x177   :  { %p1322_p4 = scmp.ne.s32.totalorder %s930_s20, %s1321_s21  ;;  %p1327_p6 = scmp.lt.s32.totalorder %s1321_s21, %s1321_s21 }
 0x179   :  { %p1328_p7 = por %p1327_p6, %p1326_p5 }
 0x17b   :  { %p1329_p8 = pnand %p1328_p7, %p1322_p4 }
 0x23d   :  { %v903_v3 = vpop.f32.mrb[8].mxu0 }
 0x23e   :  { %910 = vst [vmem:[#allocation9] sm:$0xff] %v903_v3  ;;  %v1142_v4 = vpop.f32.mrb[9].mxu0 }
 0x23f   :  { %v906_v5 = vpop.f32.mrb[10].mxu0 }
 0x240   :  { %911 = vst [vmem:[#allocation9 + $0x8] sm:$0xff] %v906_v5  ;;  %v1143_v6 = vpop.f32.mrb[11].mxu0 }
 0x241   :  { %1332 = shalt.err (!%p1329_p8)
}
 0x242   :  { %s1333_s4 = scalar_lea.hbm %s1468_s5, 256 }
 0x243   :  { %p1334_p9 = scmp.ne.s32.totalorder %s1468_s5, %s1333_s4  ;;  %p1337_p10 = scmp.lt.u32.totalorder %s1333_s4, %s1468_s5 }
 0x245   :  { %p1339_p11 = pnand %p1337_p10, %p1334_p9 }
 0x247   :  { %1342 = shalt.err (!%p1339_p11)
}
 0x248   :  { %935 = dma.vmem_to_hbm [thread:$0]  %s930_s20, 256, %s1468_s5, [#allocation10], %s1361_s16, %s1361_s16, %s1362_s1  }
 0x249   :  { %1347 = dma.done.wait [#allocation4], 256  }
 0x24a   :  { %1348 = vsyncadd [#allocation4], 4294967040 }
 0x24b   :  { %1349 = dma.done.wait [#allocation10], 256  }
 0x24c   :  { %1350 = vsyncadd [#allocation10], 4294967040 }
 0x24d   :  { %942 = vsyncpa [#allocation3], 1 }
 0x24e   :  { %943 = vsyncpa [#allocation6], 1 }
 0x24f   :  { %944 = vsyncpa [#allocation4], 1 }
 0x250   :  { %945 = vsyncpa [#allocation10], 1 }

</bundles_post_ra>
